<compile_context>
chip_gen: v7x
topology: tpu7x:2x2x1
jax: 0.10.0
libtpu: 0.0.40
codegen_flags: <defaults>
</compile_context>

<pallas_src>
import functools

import jax
import jax.numpy as jnp
from jax import lax
from jax.experimental import pallas as pl
from jax.experimental.pallas import tpu as pltpu

EPS = 1e-5


# ---------------------------------------------------------------------------
# Pass 1: 3x3 conv as a single wide matmul (weights on LHS, lane-dense output)
#         + per-image BN partial sums.
# ---------------------------------------------------------------------------
def _conv_stats_kernel(x_ref, w_ref, conv_ref, stats_ref, patches_ref, *, width):
    # x_ref:       (1, Cin, H*W)   f32  — one NCHW image, spatial dims flattened
    # w_ref:       (Cout, 9*Cin)   bf16 — 3x3 taps folded into the K dimension
    # conv_ref:    (1, Cout, H*W)  f32  — channel-major, lane-dense conv output
    # stats_ref:   (1, Cout, 2)    f32  — per-image [sum, sum_sq] per channel
    # patches_ref: (9*Cin, H*W)    bf16 — im2col staging scratch, lane-dense
    _, cin, hw = x_ref.shape
    w = width

    # Zero the staging buffer once per image: the lanes left untouched below are
    # exactly the "same"-padding halo positions, so no padded copy of x is ever
    # materialized in HBM.
    patches_ref[...] = jnp.zeros(patches_ref.shape, patches_ref.dtype)

    for kh in range(3):
        dh = kh - 1
        for kw in range(3):
            dw = kw - 1
            t = kh * 3 + kw
            s = dh * w + dw                       # tap output p reads flat p + s
            lo, hi = max(0, -s), hw - max(0, s)   # positions that stay in-image
            # bf16 cast happens in-register on the loaded slice (MXU fast dtype).
            src = x_ref[0, :, lo + s:hi + s].astype(jnp.bfloat16)  # (Cin, hi-lo)
            if dw != 0:
                # Mask the width wrap-around (w + dw crossing a row boundary);
                # the height halo is already handled by the [lo, hi) clipping.
                w_of_p = (lax.broadcasted_iota(jnp.int32, (1, hi - lo), 1) + lo) % w
                edge = (w - 1) if dw == 1 else 0
                src = jnp.where(w_of_p != edge, src, jnp.zeros_like(src))
            patches_ref[t * cin:(t + 1) * cin, lo:hi] = src

    # One wide MXU matmul, weights on the LHS, so the result (Cout, H*W) is
    # lane-dense and already NCHW-ordered: unmasked stores, no output transpose.
    acc = jnp.dot(w_ref[...], patches_ref[...],
                  preferred_element_type=jnp.float32)

    # Per-image BN partial sums: cheap lane reductions on the lane-dense acc.
    stats_ref[0, :, 0:1] = jnp.sum(acc, axis=1, keepdims=True)
    stats_ref[0, :, 1:2] = jnp.sum(acc * acc, axis=1, keepdims=True)
    conv_ref[0] = acc


# ---------------------------------------------------------------------------
# Pass 2: fused BatchNorm (affine) + ReLU, lane-dense, in place.
# ---------------------------------------------------------------------------
def _bn_relu_kernel(conv_ref, scale_ref, shift_ref, o_ref):
    # conv_ref / o_ref:      (1, Cout, tL) f32 (same HBM buffer, aliased)
    # scale_ref / shift_ref: (Cout, 1)     f32, lane-broadcast in-kernel
    o_ref[...] = jnp.maximum(
        conv_ref[...] * scale_ref[...] + shift_ref[...], 0.0)


def _pick_lane_tile(hw, cout, target_bytes=2 << 20):
    """Largest lane tile that divides hw, is a multiple of 128 (or hw itself),
    and keeps one f32 block near target_bytes (the aliased in/out block is
    double-buffered on both sides, so ~4x this lives in VMEM)."""
    if hw % 128 != 0:
        return hw          # correct, but masked stores; fine for odd sizes
    max_lanes = max(128, target_bytes // (4 * cout))
    if hw <= max_lanes:
        return hw
    best = 128
    for cand in range(256, hw + 1, 128):
        if hw % cand == 0 and cand <= max_lanes:
            best = cand
    return best


@jax.jit
def conv_relu(x_nchw, w_oihw, bias, gamma, beta):
    """ConvRelu forward. x: (N, Cin, H, W); w: (Cout, Cin, 3, 3); rest (Cout,)."""
    N, Cin, H, W = x_nchw.shape
    Cout = w_oihw.shape[0]
    HW = H * W

    # FREE reshape (NCHW is contiguous): no transpose / pad / cast copy of x.
    x_flat = x_nchw.reshape(N, Cin, HW)

    # OIHW -> (Cout, kh, kw, Cin) -> (Cout, 9*Cin): taps folded into K, matching
    # the kernel's tap order k = (kh*3 + kw)*Cin + c. Tiny, done once.
    w2 = jnp.transpose(w_oihw, (0, 2, 3, 1)).reshape(Cout, 9 * Cin)
    w2 = w2.astype(jnp.bfloat16)

    # Conv bias is a per-channel constant added before training-mode BatchNorm;
    # the mean subtraction cancels it exactly and it does not change the
    # variance, so it is dropped (saves an N*H*W*Cout add + one operand DMA).
    del bias

    conv_out, stats = pl.pallas_call(
        functools.partial(_conv_stats_kernel, width=W),
        out_shape=(
            jax.ShapeDtypeStruct((N, Cout, HW), jnp.float32),
            jax.ShapeDtypeStruct((N, Cout, 2), jnp.float32),
        ),
        grid=(N,),
        in_specs=[
            pl.BlockSpec((1, Cin, HW), lambda n: (n, 0, 0)),
            pl.BlockSpec((Cout, 9 * Cin), lambda n: (0, 0)),
        ],
        out_specs=(
            pl.BlockSpec((1, Cout, HW), lambda n: (n, 0, 0)),
            pl.BlockSpec((1, Cout, 2), lambda n: (n, 0, 0)),
        ),
        scratch_shapes=[pltpu.VMEM((9 * Cin, HW), jnp.bfloat16)],
        compiler_params=pltpu.CompilerParams(dimension_semantics=("parallel",)),
    )(x_flat, w2)
    # TODO(synk): PyTorch train-mode BatchNorm also updates running_mean/var
    # (momentum 0.1) as a buffer side effect; that state is not materialized
    # here since it does not affect the forward output.

    # Global batch statistics from the per-image partial sums (tiny, fused XLA).
    count = jnp.float32(N * HW)
    sums = jnp.sum(stats, axis=0)                               # (Cout, 2)
    mean = sums[:, 0] / count
    var = jnp.maximum(sums[:, 1] / count - mean * mean, 0.0)    # biased variance
    scale = gamma.astype(jnp.float32) * lax.rsqrt(var + EPS)
    shift = beta.astype(jnp.float32) - mean * scale
    scale2 = scale.reshape(Cout, 1)
    shift2 = shift.reshape(Cout, 1)

    # Pass 2: BN + ReLU in place on the channel-major buffer, large lane tiles
    # (per-step overhead amortized), output already NCHW so no transpose after.
    tl = _pick_lane_tile(HW, Cout)
    y = pl.pallas_call(
        _bn_relu_kernel,
        out_shape=jax.ShapeDtypeStruct((N, Cout, HW), jnp.float32),
        grid=(N, HW // tl),
        in_specs=[
            pl.BlockSpec((1, Cout, tl), lambda n, l: (n, 0, l)),
            pl.BlockSpec((Cout, 1), lambda n, l: (0, 0)),
            pl.BlockSpec((Cout, 1), lambda n, l: (0, 0)),
        ],
        out_specs=pl.BlockSpec((1, Cout, tl), lambda n, l: (n, 0, l)),
        input_output_aliases={0: 0},   # normalize + ReLU in place
        compiler_params=pltpu.CompilerParams(
            dimension_semantics=("parallel", "parallel")),
    )(conv_out, scale2, shift2)

    # Channel-major buffer is already NCHW-flattened: free reshape, no transpose.
    return y.reshape(N, Cout, H, W)


def reference(x, w, b, gamma, beta, conv_dtype=jnp.float32):
    """Pure-JAX reference: Conv2d(3x3, pad=1) + BatchNorm2d(train) + ReLU."""
    y = lax.conv_general_dilated(
        x.astype(conv_dtype), w.astype(conv_dtype),
        window_strides=(1, 1), padding=((1, 1), (1, 1)),
        dimension_numbers=("NCHW", "OIHW", "NCHW"),
        preferred_element_type=jnp.float32)
    y = y + b[None, :, None, None]
    mean = jnp.mean(y, axis=(0, 2, 3), keepdims=True)
    var = jnp.mean((y - mean) ** 2, axis=(0, 2, 3), keepdims=True)
    y = (y - mean) * lax.rsqrt(var + EPS)
    y = gamma[None, :, None, None] * y + beta[None, :, None, None]
    return jnp.maximum(y, 0.0)


if __name__ == "__main__":
    N, Cin, Cout, H, W = 2, 4, 8, 16, 16

    key = jax.random.PRNGKey(0)
    kx, kw, kb, kg, kbeta = jax.random.split(key, 5)

    x = jax.random.normal(kx, (N, Cin, H, W), jnp.float32)
    # Conv2d(4, 8, 3, padding=1) parameter shapes: weight (8,4,3,3), bias (8,)
    w = jax.random.normal(kw, (Cout, Cin, 3, 3), jnp.float32) * 0.1
    b = jax.random.normal(kb, (Cout,), jnp.float32) * 0.1
    # BatchNorm2d(8) affine params, perturbed for a nontrivial test.
    gamma = 1.0 + 0.1 * jax.random.normal(kg, (Cout,), jnp.float32)
    beta = 0.1 * jax.random.normal(kbeta, (Cout,), jnp.float32)

    out = jax.block_until_ready(conv_relu(x, w, b, gamma, beta))
    assert out.shape == (N, Cout, H, W)

    # Tight check against a reference with the same bf16 MXU-operand rounding.
    ref_bf16 = reference(x, w, b, gamma, beta, conv_dtype=jnp.bfloat16)
    assert jnp.allclose(out, ref_bf16, atol=5e-4, rtol=5e-4), (
        float(jnp.max(jnp.abs(out - ref_bf16))))
    # Sanity check against strict f32 PyTorch semantics (bf16 rounding budget).
    ref_f32 = reference(x, w, b, gamma, beta, conv_dtype=jnp.float32)
    assert jnp.allclose(out, ref_f32, atol=5e-2, rtol=5e-2), (
        float(jnp.max(jnp.abs(out - ref_f32))))

    print("KERNEL_OK")
</pallas_src>

<mosaic_0001>
module attributes {stable_mosaic.version = 11 : i64} {
  func.func @_bn_relu_kernel(%arg0: i32, %arg1: i32, %arg2: memref<1x8x256xf32, #tpu.memory_space<vmem>>, %arg3: memref<8x1xf32, #tpu.memory_space<vmem>>, %arg4: memref<8x1xf32, #tpu.memory_space<vmem>>, %arg5: memref<1x8x256xf32, #tpu.memory_space<vmem>>) attributes {dimension_semantics = [#tpu.dimension_semantics<parallel>, #tpu.dimension_semantics<parallel>], iteration_bounds = array<i64: 2, 1>, scalar_prefetch = 0 : i64, scratch_operands = 0 : i64, tpu.core_type = #tpu.core_type<tc>, window_params = [{transform_indices = @transform_0, window_bounds = array<i64: 1, 8, 256>}, {pipeline_mode = #tpu.pipeline_mode<synchronous>, transform_indices = @transform_1, window_bounds = array<i64: 8, 1>}, {pipeline_mode = #tpu.pipeline_mode<synchronous>, transform_indices = @transform_2, window_bounds = array<i64: 8, 1>}, {transform_indices = @transform_3, window_bounds = array<i64: 1, 8, 256>}]} {
    %c0 = arith.constant 0 : index
    %c0_0 = arith.constant 0 : index
    %c0_1 = arith.constant 0 : index
    %0 = vector.load %arg2[%c0, %c0_0, %c0_1] : memref<1x8x256xf32, #tpu.memory_space<vmem>>, vector<1x8x256xf32>
    %c0_2 = arith.constant 0 : index
    %c0_3 = arith.constant 0 : index
    %1 = vector.load %arg3[%c0_2, %c0_3] : memref<8x1xf32, #tpu.memory_space<vmem>>, vector<8x1xf32>
    %2 = vector.shape_cast %1 : vector<8x1xf32> to vector<1x8x1xf32>
    %3 = vector.broadcast %2 : vector<1x8x1xf32> to vector<1x8x256xf32>
    %4 = arith.mulf %0, %3 : vector<1x8x256xf32>
    %c0_4 = arith.constant 0 : index
    %c0_5 = arith.constant 0 : index
    %5 = vector.load %arg4[%c0_4, %c0_5] : memref<8x1xf32, #tpu.memory_space<vmem>>, vector<8x1xf32>
    %6 = vector.shape_cast %5 : vector<8x1xf32> to vector<1x8x1xf32>
    %7 = vector.broadcast %6 : vector<1x8x1xf32> to vector<1x8x256xf32>
    %8 = arith.addf %4, %7 : vector<1x8x256xf32>
    %cst = arith.constant 0.000000e+00 : f32
    %9 = vector.broadcast %cst : f32 to vector<1x8x256xf32>
    %10 = arith.maximumf %8, %9 : vector<1x8x256xf32>
    %c0_6 = arith.constant 0 : index
    %c0_7 = arith.constant 0 : index
    %c0_8 = arith.constant 0 : index
    %11 = vector.load %arg5[%c0_6, %c0_7, %c0_8] : memref<1x8x256xf32, #tpu.memory_space<vmem>>, vector<1x8x256xf32>
    tpu.vector_store %arg5[%c0_6, %c0_7, %c0_8], %10 {strides = array<i32>} : memref<1x8x256xf32, #tpu.memory_space<vmem>>, vector<1x8x256xf32>,
    return
  }
  func.func @transform_0(%arg0: i32, %arg1: i32) -> (i32, i32, i32) {
    %c0_i32 = arith.constant 0 : i32
    %c0_i32_0 = arith.constant 0 : i32
    return %arg0, %c0_i32, %arg1 : i32, i32, i32
  }
  func.func @transform_1(%arg0: i32, %arg1: i32) -> (i32, i32) {
    %c0_i32 = arith.constant 0 : i32
    %c0_i32_0 = arith.constant 0 : i32
    %c0_i32_1 = arith.constant 0 : i32
    return %c0_i32, %c0_i32_0 : i32, i32
  }
  func.func @transform_2(%arg0: i32, %arg1: i32) -> (i32, i32) {
    %c0_i32 = arith.constant 0 : i32
    %c0_i32_0 = arith.constant 0 : i32
    %c0_i32_1 = arith.constant 0 : i32
    return %c0_i32, %c0_i32_0 : i32, i32
  }
  func.func @transform_3(%arg0: i32, %arg1: i32) -> (i32, i32, i32) {
    %c0_i32 = arith.constant 0 : i32
    %c0_i32_0 = arith.constant 0 : i32
    return %arg0, %c0_i32, %arg1 : i32, i32, i32
  }
}

module attributes {stable_mosaic.version = 11 : i64} {
  func.func @_conv_stats_kernel(%arg0: i32, %arg1: memref<1x4x256xf32, #tpu.memory_space<vmem>>, %arg2: memref<8x36xbf16, #tpu.memory_space<vmem>>, %arg3: memref<1x8x256xf32, #tpu.memory_space<vmem>>, %arg4: memref<1x8x2xf32, #tpu.memory_space<vmem>>, %arg5: memref<36x256xbf16, #tpu.memory_space<vmem>>) attributes {dimension_semantics = [#tpu.dimension_semantics<parallel>], iteration_bounds = array<i64: 2>, scalar_prefetch = 0 : i64, scratch_operands = 1 : i64, tpu.core_type = #tpu.core_type<tc>, window_params = [{transform_indices = @transform_0, window_bounds = array<i64: 1, 4, 256>}, {pipeline_mode = #tpu.pipeline_mode<synchronous>, transform_indices = @transform_1, window_bounds = array<i64: 8, 36>}, {transform_indices = @transform_2, window_bounds = array<i64: 1, 8, 256>}, {transform_indices = @transform_3, window_bounds = array<i64: 1, 8, 2>}]} {
    %cst = arith.constant 0.000000e+00 : bf16
    %0 = vector.broadcast %cst : bf16 to vector<36x256xbf16>
    %c0 = arith.constant 0 : index
    %c0_0 = arith.constant 0 : index
    %1 = vector.load %arg5[%c0, %c0_0] : memref<36x256xbf16, #tpu.memory_space<vmem>>, vector<36x256xbf16>
    tpu.vector_store %arg5[%c0, %c0_0], %0 {strides = array<i32>} : memref<36x256xbf16, #tpu.memory_space<vmem>>, vector<36x256xbf16>,
    %c0_1 = arith.constant 0 : index
    %c0_2 = arith.constant 0 : index
    %c0_3 = arith.constant 0 : index
    %2 = vector.load %arg1[%c0_1, %c0_2, %c0_3] : memref<1x4x256xf32, #tpu.memory_space<vmem>>, vector<1x4x239xf32>
    %3 = vector.shape_cast %2 : vector<1x4x239xf32> to vector<4x239xf32>
    %4 = arith.truncf %3 : vector<4x239xf32> to vector<4x239xbf16>
    %5 = tpu.iota {dimensions = array<i32: 1>} : vector<1x239xi32>
    %c17_i32 = arith.constant 17 : i32
    %6 = vector.broadcast %c17_i32 : i32 to vector<1x239xi32>
    %7 = arith.addi %5, %6 : vector<1x239xi32>
    %c16_i32 = arith.constant 16 : i32
    %c0_i32 = arith.constant 0 : i32
    %8 = arith.cmpi eq, %c16_i32, %c0_i32 : i32
    %c1_i32 = arith.constant 1 : i32
    %9 = arith.select %8, %c1_i32, %c16_i32 : i32
    %10 = vector.broadcast %9 : i32 to vector<1x239xi32>
    %11 = arith.remsi %7, %10 : vector<1x239xi32>
    %c0_i32_4 = arith.constant 0 : i32
    %12 = vector.broadcast %c0_i32_4 : i32 to vector<1x239xi32>
    %13 = arith.cmpi ne, %11, %12 : vector<1x239xi32>
    %c0_i32_5 = arith.constant 0 : i32
    %14 = vector.broadcast %c0_i32_5 : i32 to vector<1x239xi32>
    %15 = arith.cmpi slt, %11, %14 : vector<1x239xi32>
    %c0_i32_6 = arith.constant 0 : i32
    %16 = arith.cmpi slt, %9, %c0_i32_6 : i32
    %17 = vector.broadcast %16 : i1 to vector<1x239xi1>
    %18 = vector.broadcast %17 : vector<1x239xi1> to vector<1x239xi1>
    %19 = arith.xori %15, %18 : vector<1x239xi1>
    %20 = arith.andi %19, %13 : vector<1x239xi1>
    %21 = vector.broadcast %9 : i32 to vector<1x239xi32>
    %22 = arith.addi %11, %21 : vector<1x239xi32>
    %23 = arith.select %20, %22, %11 : vector<1x239xi1>, vector<1x239xi32>
    %c0_i32_7 = arith.constant 0 : i32
    %24 = vector.broadcast %c0_i32_7 : i32 to vector<1x239xi32>
    %25 = arith.cmpi ne, %23, %24 : vector<1x239xi32>
    %cst_8 = arith.constant 0.000000e+00 : bf16
    %26 = vector.broadcast %cst_8 : bf16 to vector<4x239xbf16>
    %27 = vector.shape_cast %25 : vector<1x239xi1> to vector<1x239xi1>
    %28 = vector.broadcast %27 : vector<1x239xi1> to vector<4x239xi1>
    %29 = arith.select %28, %4, %26 : vector<4x239xi1>, vector<4x239xbf16>
    %c0_9 = arith.constant 0 : index
    %c17 = arith.constant 17 : index
    %30 = vector.load %arg5[%c0_9, %c17] : memref<36x256xbf16, #tpu.memory_space<vmem>>, vector<4x239xbf16>
    tpu.vector_store %arg5[%c0_9, %c17], %29 {strides = array<i32>} : memref<36x256xbf16, #tpu.memory_space<vmem>>, vector<4x239xbf16>,
    %c0_10 = arith.constant 0 : index
    %c0_11 = arith.constant 0 : index
    %c0_12 = arith.constant 0 : index
    %31 = vector.load %arg1[%c0_10, %c0_11, %c0_12] : memref<1x4x256xf32, #tpu.memory_space<vmem>>, vector<1x4x240xf32>
    %32 = vector.shape_cast %31 : vector<1x4x240xf32> to vector<4x240xf32>
    %33 = arith.truncf %32 : vector<4x240xf32> to vector<4x240xbf16>
    %c4 = arith.constant 4 : index
    %c16 = arith.constant 16 : index
    %34 = vector.load %arg5[%c4, %c16] : memref<36x256xbf16, #tpu.memory_space<vmem>>, vector<4x240xbf16>
    tpu.vector_store %arg5[%c4, %c16], %33 {strides = array<i32>} : memref<36x256xbf16, #tpu.memory_space<vmem>>, vector<4x240xbf16>,
    %c0_13 = arith.constant 0 : index
    %c0_14 = arith.constant 0 : index
    %c0_15 = arith.constant 0 : index
    %35 = vector.load %arg1[%c0_13, %c0_14, %c0_15] : memref<1x4x256xf32, #tpu.memory_space<vmem>>, vector<1x4x241xf32>
    %36 = vector.shape_cast %35 : vector<1x4x241xf32> to vector<4x241xf32>
    %37 = arith.truncf %36 : vector<4x241xf32> to vector<4x241xbf16>
    %38 = tpu.iota {dimensions = array<i32: 1>} : vector<1x241xi32>
    %c15_i32 = arith.constant 15 : i32
    %39 = vector.broadcast %c15_i32 : i32 to vector<1x241xi32>
    %40 = arith.addi %38, %39 : vector<1x241xi32>
    %c16_i32_16 = arith.constant 16 : i32
    %c0_i32_17 = arith.constant 0 : i32
    %41 = arith.cmpi eq, %c16_i32_16, %c0_i32_17 : i32
    %c1_i32_18 = arith.constant 1 : i32
    %42 = arith.select %41, %c1_i32_18, %c16_i32_16 : i32
    %43 = vector.broadcast %42 : i32 to vector<1x241xi32>
    %44 = arith.remsi %40, %43 : vector<1x241xi32>
    %c0_i32_19 = arith.constant 0 : i32
    %45 = vector.broadcast %c0_i32_19 : i32 to vector<1x241xi32>
    %46 = arith.cmpi ne, %44, %45 : vector<1x241xi32>
    %c0_i32_20 = arith.constant 0 : i32
    %47 = vector.broadcast %c0_i32_20 : i32 to vector<1x241xi32>
    %48 = arith.cmpi slt, %44, %47 : vector<1x241xi32>
    %c0_i32_21 = arith.constant 0 : i32
    %49 = arith.cmpi slt, %42, %c0_i32_21 : i32
    %50 = vector.broadcast %49 : i1 to vector<1x241xi1>
    %51 = vector.broadcast %50 : vector<1x241xi1> to vector<1x241xi1>
    %52 = arith.xori %48, %51 : vector<1x241xi1>
    %53 = arith.andi %52, %46 : vector<1x241xi1>
    %54 = vector.broadcast %42 : i32 to vector<1x241xi32>
    %55 = arith.addi %44, %54 : vector<1x241xi32>
    %56 = arith.select %53, %55, %44 : vector<1x241xi1>, vector<1x241xi32>
    %c15_i32_22 = arith.constant 15 : i32
    %57 = vector.broadcast %c15_i32_22 : i32 to vector<1x241xi32>
    %58 = arith.cmpi ne, %56, %57 : vector<1x241xi32>
    %cst_23 = arith.constant 0.000000e+00 : bf16
    %59 = vector.broadcast %cst_23 : bf16 to vector<4x241xbf16>
    %60 = vector.shape_cast %58 : vector<1x241xi1> to vector<1x241xi1>
    %61 = vector.broadcast %60 : vector<1x241xi1> to vector<4x241xi1>
    %62 = arith.select %61, %37, %59 : vector<4x241xi1>, vector<4x241xbf16>
    %c8 = arith.constant 8 : index
    %c15 = arith.constant 15 : index
    %63 = vector.load %arg5[%c8, %c15] : memref<36x256xbf16, #tpu.memory_space<vmem>>, vector<4x241xbf16>
    tpu.vector_store %arg5[%c8, %c15], %62 {strides = array<i32>} : memref<36x256xbf16, #tpu.memory_space<vmem>>, vector<4x241xbf16>,
    %c0_24 = arith.constant 0 : index
    %c0_25 = arith.constant 0 : index
    %c0_26 = arith.constant 0 : index
    %64 = vector.load %arg1[%c0_24, %c0_25, %c0_26] : memref<1x4x256xf32, #tpu.memory_space<vmem>>, vector<1x4x255xf32>
    %65 = vector.shape_cast %64 : vector<1x4x255xf32> to vector<4x255xf32>
    %66 = arith.truncf %65 : vector<4x255xf32> to vector<4x255xbf16>
    %67 = tpu.iota {dimensions = array<i32: 1>} : vector<1x255xi32>
    %c1_i32_27 = arith.constant 1 : i32
    %68 = vector.broadcast %c1_i32_27 : i32 to vector<1x255xi32>
    %69 = arith.addi %67, %68 : vector<1x255xi32>
    %c16_i32_28 = arith.constant 16 : i32
    %c0_i32_29 = arith.constant 0 : i32
    %70 = arith.cmpi eq, %c16_i32_28, %c0_i32_29 : i32
    %c1_i32_30 = arith.constant 1 : i32
    %71 = arith.select %70, %c1_i32_30, %c16_i32_28 : i32
    %72 = vector.broadcast %71 : i32 to vector<1x255xi32>
    %73 = arith.remsi %69, %72 : vector<1x255xi32>
    %c0_i32_31 = arith.constant 0 : i32
    %74 = vector.broadcast %c0_i32_31 : i32 to vector<1x255xi32>
    %75 = arith.cmpi ne, %73, %74 : vector<1x255xi32>
    %c0_i32_32 = arith.constant 0 : i32
    %76 = vector.broadcast %c0_i32_32 : i32 to vector<1x255xi32>
    %77 = arith.cmpi slt, %73, %76 : vector<1x255xi32>
    %c0_i32_33 = arith.constant 0 : i32
    %78 = arith.cmpi slt, %71, %c0_i32_33 : i32
    %79 = vector.broadcast %78 : i1 to vector<1x255xi1>
    %80 = vector.broadcast %79 : vector<1x255xi1> to vector<1x255xi1>
    %81 = arith.xori %77, %80 : vector<1x255xi1>
    %82 = arith.andi %81, %75 : vector<1x255xi1>
    %83 = vector.broadcast %71 : i32 to vector<1x255xi32>
    %84 = arith.addi %73, %83 : vector<1x255xi32>
    %85 = arith.select %82, %84, %73 : vector<1x255xi1>, vector<1x255xi32>
    %c0_i32_34 = arith.constant 0 : i32
    %86 = vector.broadcast %c0_i32_34 : i32 to vector<1x255xi32>
    %87 = arith.cmpi ne, %85, %86 : vector<1x255xi32>
    %cst_35 = arith.constant 0.000000e+00 : bf16
    %88 = vector.broadcast %cst_35 : bf16 to vector<4x255xbf16>
    %89 = vector.shape_cast %87 : vector<1x255xi1> to vector<1x255xi1>
    %90 = vector.broadcast %89 : vector<1x255xi1> to vector<4x255xi1>
    %91 = arith.select %90, %66, %88 : vector<4x255xi1>, vector<4x255xbf16>
    %c12 = arith.constant 12 : index
    %c1 = arith.constant 1 : index
    %92 = vector.load %arg5[%c12, %c1] : memref<36x256xbf16, #tpu.memory_space<vmem>>, vector<4x255xbf16>
    tpu.vector_store %arg5[%c12, %c1], %91 {strides = array<i32>} : memref<36x256xbf16, #tpu.memory_space<vmem>>, vector<4x255xbf16>,
    %c0_36 = arith.constant 0 : index
    %c0_37 = arith.constant 0 : index
    %c0_38 = arith.constant 0 : index
    %93 = vector.load %arg1[%c0_36, %c0_37, %c0_38] : memref<1x4x256xf32, #tpu.memory_space<vmem>>, vector<1x4x256xf32>
    %94 = vector.shape_cast %93 : vector<1x4x256xf32> to vector<4x256xf32>
    %95 = arith.truncf %94 : vector<4x256xf32> to vector<4x256xbf16>
    %c16_39 = arith.constant 16 : index
    %c0_40 = arith.constant 0 : index
    %96 = vector.load %arg5[%c16_39, %c0_40] : memref<36x256xbf16, #tpu.memory_space<vmem>>, vector<4x256xbf16>
    tpu.vector_store %arg5[%c16_39, %c0_40], %95 {strides = array<i32>} : memref<36x256xbf16, #tpu.memory_space<vmem>>, vector<4x256xbf16>,
    %c0_41 = arith.constant 0 : index
    %c0_42 = arith.constant 0 : index
    %c1_43 = arith.constant 1 : index
    %97 = vector.load %arg1[%c0_41, %c0_42, %c1_43] : memref<1x4x256xf32, #tpu.memory_space<vmem>>, vector<1x4x255xf32>
    %98 = vector.shape_cast %97 : vector<1x4x255xf32> to vector<4x255xf32>
    %99 = arith.truncf %98 : vector<4x255xf32> to vector<4x255xbf16>
    %100 = tpu.iota {dimensions = array<i32: 1>} : vector<1x255xi32>
    %c0_i32_44 = arith.constant 0 : i32
    %101 = vector.broadcast %c0_i32_44 : i32 to vector<1x255xi32>
    %102 = arith.addi %100, %101 : vector<1x255xi32>
    %c16_i32_45 = arith.constant 16 : i32
    %c0_i32_46 = arith.constant 0 : i32
    %103 = arith.cmpi eq, %c16_i32_45, %c0_i32_46 : i32
    %c1_i32_47 = arith.constant 1 : i32
    %104 = arith.select %103, %c1_i32_47, %c16_i32_45 : i32
    %105 = vector.broadcast %104 : i32 to vector<1x255xi32>
    %106 = arith.remsi %102, %105 : vector<1x255xi32>
    %c0_i32_48 = arith.constant 0 : i32
    %107 = vector.broadcast %c0_i32_48 : i32 to vector<1x255xi32>
    %108 = arith.cmpi ne, %106, %107 : vector<1x255xi32>
    %c0_i32_49 = arith.constant 0 : i32
    %109 = vector.broadcast %c0_i32_49 : i32 to vector<1x255xi32>
    %110 = arith.cmpi slt, %106, %109 : vector<1x255xi32>
    %c0_i32_50 = arith.constant 0 : i32
    %111 = arith.cmpi slt, %104, %c0_i32_50 : i32
    %112 = vector.broadcast %111 : i1 to vector<1x255xi1>
    %113 = vector.broadcast %112 : vector<1x255xi1> to vector<1x255xi1>
    %114 = arith.xori %110, %113 : vector<1x255xi1>
    %115 = arith.andi %114, %108 : vector<1x255xi1>
    %116 = vector.broadcast %104 : i32 to vector<1x255xi32>
    %117 = arith.addi %106, %116 : vector<1x255xi32>
    %118 = arith.select %115, %117, %106 : vector<1x255xi1>, vector<1x255xi32>
    %c15_i32_51 = arith.constant 15 : i32
    %119 = vector.broadcast %c15_i32_51 : i32 to vector<1x255xi32>
    %120 = arith.cmpi ne, %118, %119 : vector<1x255xi32>
    %cst_52 = arith.constant 0.000000e+00 : bf16
    %121 = vector.broadcast %cst_52 : bf16 to vector<4x255xbf16>
    %122 = vector.shape_cast %120 : vector<1x255xi1> to vector<1x255xi1>
    %123 = vector.broadcast %122 : vector<1x255xi1> to vector<4x255xi1>
    %124 = arith.select %123, %99, %121 : vector<4x255xi1>, vector<4x255xbf16>
    %c20 = arith.constant 20 : index
    %c0_53 = arith.constant 0 : index
    %125 = vector.load %arg5[%c20, %c0_53] : memref<36x256xbf16, #tpu.memory_space<vmem>>, vector<4x255xbf16>
    tpu.vector_store %arg5[%c20, %c0_53], %124 {strides = array<i32>} : memref<36x256xbf16, #tpu.memory_space<vmem>>, vector<4x255xbf16>,
    %c0_54 = arith.constant 0 : index
    %c0_55 = arith.constant 0 : index
    %c15_56 = arith.constant 15 : index
    %126 = vector.load %arg1[%c0_54, %c0_55, %c15_56] : memref<1x4x256xf32, #tpu.memory_space<vmem>>, vector<1x4x241xf32>
    %127 = vector.shape_cast %126 : vector<1x4x241xf32> to vector<4x241xf32>
    %128 = arith.truncf %127 : vector<4x241xf32> to vector<4x241xbf16>
    %129 = tpu.iota {dimensions = array<i32: 1>} : vector<1x241xi32>
    %c0_i32_57 = arith.constant 0 : i32
    %130 = vector.broadcast %c0_i32_57 : i32 to vector<1x241xi32>
    %131 = arith.addi %129, %130 : vector<1x241xi32>
    %c16_i32_58 = arith.constant 16 : i32
    %c0_i32_59 = arith.constant 0 : i32
    %132 = arith.cmpi eq, %c16_i32_58, %c0_i32_59 : i32
    %c1_i32_60 = arith.constant 1 : i32
    %133 = arith.select %132, %c1_i32_60, %c16_i32_58 : i32
    %134 = vector.broadcast %133 : i32 to vector<1x241xi32>
    %135 = arith.remsi %131, %134 : vector<1x241xi32>
    %c0_i32_61 = arith.constant 0 : i32
    %136 = vector.broadcast %c0_i32_61 : i32 to vector<1x241xi32>
    %137 = arith.cmpi ne, %135, %136 : vector<1x241xi32>
    %c0_i32_62 = arith.constant 0 : i32
    %138 = vector.broadcast %c0_i32_62 : i32 to vector<1x241xi32>
    %139 = arith.cmpi slt, %135, %138 : vector<1x241xi32>
    %c0_i32_63 = arith.constant 0 : i32
    %140 = arith.cmpi slt, %133, %c0_i32_63 : i32
    %141 = vector.broadcast %140 : i1 to vector<1x241xi1>
    %142 = vector.broadcast %141 : vector<1x241xi1> to vector<1x241xi1>
    %143 = arith.xori %139, %142 : vector<1x241xi1>
    %144 = arith.andi %143, %137 : vector<1x241xi1>
    %145 = vector.broadcast %133 : i32 to vector<1x241xi32>
    %146 = arith.addi %135, %145 : vector<1x241xi32>
    %147 = arith.select %144, %146, %135 : vector<1x241xi1>, vector<1x241xi32>
    %c0_i32_64 = arith.constant 0 : i32
    %148 = vector.broadcast %c0_i32_64 : i32 to vector<1x241xi32>
    %149 = arith.cmpi ne, %147, %148 : vector<1x241xi32>
    %cst_65 = arith.constant 0.000000e+00 : bf16
    %150 = vector.broadcast %cst_65 : bf16 to vector<4x241xbf16>
    %151 = vector.shape_cast %149 : vector<1x241xi1> to vector<1x241xi1>
    %152 = vector.broadcast %151 : vector<1x241xi1> to vector<4x241xi1>
    %153 = arith.select %152, %128, %150 : vector<4x241xi1>, vector<4x241xbf16>
    %c24 = arith.constant 24 : index
    %c0_66 = arith.constant 0 : index
    %154 = vector.load %arg5[%c24, %c0_66] : memref<36x256xbf16, #tpu.memory_space<vmem>>, vector<4x241xbf16>
    tpu.vector_store %arg5[%c24, %c0_66], %153 {strides = array<i32>} : memref<36x256xbf16, #tpu.memory_space<vmem>>, vector<4x241xbf16>,
    %c0_67 = arith.constant 0 : index
    %c0_68 = arith.constant 0 : index
    %c16_69 = arith.constant 16 : index
    %155 = vector.load %arg1[%c0_67, %c0_68, %c16_69] : memref<1x4x256xf32, #tpu.memory_space<vmem>>, vector<1x4x240xf32>
    %156 = vector.shape_cast %155 : vector<1x4x240xf32> to vector<4x240xf32>
    %157 = arith.truncf %156 : vector<4x240xf32> to vector<4x240xbf16>
    %c28 = arith.constant 28 : index
    %c0_70 = arith.constant 0 : index
    %158 = vector.load %arg5[%c28, %c0_70] : memref<36x256xbf16, #tpu.memory_space<vmem>>, vector<4x240xbf16>
    tpu.vector_store %arg5[%c28, %c0_70], %157 {strides = array<i32>} : memref<36x256xbf16, #tpu.memory_space<vmem>>, vector<4x240xbf16>,
    %c0_71 = arith.constant 0 : index
    %c0_72 = arith.constant 0 : index
    %c17_73 = arith.constant 17 : index
    %159 = vector.load %arg1[%c0_71, %c0_72, %c17_73] : memref<1x4x256xf32, #tpu.memory_space<vmem>>, vector<1x4x239xf32>
    %160 = vector.shape_cast %159 : vector<1x4x239xf32> to vector<4x239xf32>
    %161 = arith.truncf %160 : vector<4x239xf32> to vector<4x239xbf16>
    %162 = tpu.iota {dimensions = array<i32: 1>} : vector<1x239xi32>
    %c0_i32_74 = arith.constant 0 : i32
    %163 = vector.broadcast %c0_i32_74 : i32 to vector<1x239xi32>
    %164 = arith.addi %162, %163 : vector<1x239xi32>
    %c16_i32_75 = arith.constant 16 : i32
    %c0_i32_76 = arith.constant 0 : i32
    %165 = arith.cmpi eq, %c16_i32_75, %c0_i32_76 : i32
    %c1_i32_77 = arith.constant 1 : i32
    %166 = arith.select %165, %c1_i32_77, %c16_i32_75 : i32
    %167 = vector.broadcast %166 : i32 to vector<1x239xi32>
    %168 = arith.remsi %164, %167 : vector<1x239xi32>
    %c0_i32_78 = arith.constant 0 : i32
    %169 = vector.broadcast %c0_i32_78 : i32 to vector<1x239xi32>
    %170 = arith.cmpi ne, %168, %169 : vector<1x239xi32>
    %c0_i32_79 = arith.constant 0 : i32
    %171 = vector.broadcast %c0_i32_79 : i32 to vector<1x239xi32>
    %172 = arith.cmpi slt, %168, %171 : vector<1x239xi32>
    %c0_i32_80 = arith.constant 0 : i32
    %173 = arith.cmpi slt, %166, %c0_i32_80 : i32
    %174 = vector.broadcast %173 : i1 to vector<1x239xi1>
    %175 = vector.broadcast %174 : vector<1x239xi1> to vector<1x239xi1>
    %176 = arith.xori %172, %175 : vector<1x239xi1>
    %177 = arith.andi %176, %170 : vector<1x239xi1>
    %178 = vector.broadcast %166 : i32 to vector<1x239xi32>
    %179 = arith.addi %168, %178 : vector<1x239xi32>
    %180 = arith.select %177, %179, %168 : vector<1x239xi1>, vector<1x239xi32>
    %c15_i32_81 = arith.constant 15 : i32
    %181 = vector.broadcast %c15_i32_81 : i32 to vector<1x239xi32>
    %182 = arith.cmpi ne, %180, %181 : vector<1x239xi32>
    %cst_82 = arith.constant 0.000000e+00 : bf16
    %183 = vector.broadcast %cst_82 : bf16 to vector<4x239xbf16>
    %184 = vector.shape_cast %182 : vector<1x239xi1> to vector<1x239xi1>
    %185 = vector.broadcast %184 : vector<1x239xi1> to vector<4x239xi1>
    %186 = arith.select %185, %161, %183 : vector<4x239xi1>, vector<4x239xbf16>
    %c32 = arith.constant 32 : index
    %c0_83 = arith.constant 0 : index
    %187 = vector.load %arg5[%c32, %c0_83] : memref<36x256xbf16, #tpu.memory_space<vmem>>, vector<4x239xbf16>
    tpu.vector_store %arg5[%c32, %c0_83], %186 {strides = array<i32>} : memref<36x256xbf16, #tpu.memory_space<vmem>>, vector<4x239xbf16>,
    %c0_84 = arith.constant 0 : index
    %c0_85 = arith.constant 0 : index
    %188 = vector.load %arg2[%c0_84, %c0_85] : memref<8x36xbf16, #tpu.memory_space<vmem>>, vector<8x36xbf16>
    %c0_86 = arith.constant 0 : index
    %c0_87 = arith.constant 0 : index
    %189 = vector.load %arg5[%c0_86, %c0_87] : memref<36x256xbf16, #tpu.memory_space<vmem>>, vector<36x256xbf16>
    %cst_88 = arith.constant dense<0.000000e+00> : vector<8x256xf32>
    %190 = tpu.matmul %188, %189, %cst_88 {dimension_numbers = #tpu.dot_dimension_numbers<[1], [0], [0], [1], [0, 0, 1, 1], [], []>} : vector<8x36xbf16>, vector<36x256xbf16>, vector<8x256xf32> -> vector<8x256xf32>
    %cst_89 = arith.constant dense<0.000000e+00> : vector<8xf32>
    %191 = vector.multi_reduction <add>, %190, %cst_89 [1] : vector<8x256xf32> to vector<8xf32>
    %192 = vector.shape_cast %191 : vector<8xf32> to vector<8x1xf32>
    %c0_90 = arith.constant 0 : index
    %c0_91 = arith.constant 0 : index
    %c0_92 = arith.constant 0 : index
    %193 = vector.load %arg4[%c0_90, %c0_91, %c0_92] : memref<1x8x2xf32, #tpu.memory_space<vmem>>, vector<1x8x1xf32>
    %194 = vector.shape_cast %193 : vector<1x8x1xf32> to vector<8x1xf32>
    %195 = vector.shape_cast %192 : vector<8x1xf32> to vector<1x8x1xf32>
    tpu.vector_store %arg4[%c0_90, %c0_91, %c0_92], %195 {strides = array<i32>} : memref<1x8x2xf32, #tpu.memory_space<vmem>>, vector<1x8x1xf32>,
    %196 = arith.mulf %190, %190 : vector<8x256xf32>
    %cst_93 = arith.constant dense<0.000000e+00> : vector<8xf32>
    %197 = vector.multi_reduction <add>, %196, %cst_93 [1] : vector<8x256xf32> to vector<8xf32>
    %198 = vector.shape_cast %197 : vector<8xf32> to vector<8x1xf32>
    %c0_94 = arith.constant 0 : index
    %c0_95 = arith.constant 0 : index
    %c1_96 = arith.constant 1 : index
    %199 = vector.load %arg4[%c0_94, %c0_95, %c1_96] : memref<1x8x2xf32, #tpu.memory_space<vmem>>, vector<1x8x1xf32>
    %200 = vector.shape_cast %199 : vector<1x8x1xf32> to vector<8x1xf32>
    %201 = vector.shape_cast %198 : vector<8x1xf32> to vector<1x8x1xf32>
    tpu.vector_store %arg4[%c0_94, %c0_95, %c1_96], %201 {strides = array<i32>} : memref<1x8x2xf32, #tpu.memory_space<vmem>>, vector<1x8x1xf32>,
    %c0_97 = arith.constant 0 : index
    %c0_98 = arith.constant 0 : index
    %c0_99 = arith.constant 0 : index
    %202 = vector.load %arg3[%c0_97, %c0_98, %c0_99] : memref<1x8x256xf32, #tpu.memory_space<vmem>>, vector<1x8x256xf32>
    %203 = vector.shape_cast %202 : vector<1x8x256xf32> to vector<8x256xf32>
    %204 = vector.shape_cast %190 : vector<8x256xf32> to vector<1x8x256xf32>
    tpu.vector_store %arg3[%c0_97, %c0_98, %c0_99], %204 {strides = array<i32>} : memref<1x8x256xf32, #tpu.memory_space<vmem>>, vector<1x8x256xf32>,
    return
  }
  func.func @transform_0(%arg0: i32) -> (i32, i32, i32) {
    %c0_i32 = arith.constant 0 : i32
    %c0_i32_0 = arith.constant 0 : i32
    %c0_i32_1 = arith.constant 0 : i32
    return %arg0, %c0_i32, %c0_i32_0 : i32, i32, i32
  }
  func.func @transform_1(%arg0: i32) -> (i32, i32) {
    %c0_i32 = arith.constant 0 : i32
    %c0_i32_0 = arith.constant 0 : i32
    %c0_i32_1 = arith.constant 0 : i32
    return %c0_i32, %c0_i32_0 : i32, i32
  }
  func.func @transform_2(%arg0: i32) -> (i32, i32, i32) {
    %c0_i32 = arith.constant 0 : i32
    %c0_i32_0 = arith.constant 0 : i32
    %c0_i32_1 = arith.constant 0 : i32
    return %arg0, %c0_i32, %c0_i32_0 : i32, i32, i32
  }
  func.func @transform_3(%arg0: i32) -> (i32, i32, i32) {
    %c0_i32 = arith.constant 0 : i32
    %c0_i32_0 = arith.constant 0 : i32
    %c0_i32_1 = arith.constant 0 : i32
    return %arg0, %c0_i32, %c0_i32_0 : i32, i32, i32
  }
}

</mosaic_0001>

<bundles_post_ra>
// kernel: conv_relu.3
= control target key start
LH: loop header
LB: loop body
LE: loop exit
PB: predicated region body
PF: predicated region fallthrough
CT: control target
= control target key end

     0   :  { %s403_s12 = smov 0   ;;  %s405_s13 = smov 0   ;;  %s442_s0 = inlined_call_operand.vmem [shape: f32[2,8,256], index: 0, kind: input, shape index: {}, may-alias: {0,3}]   ;;  %s443_s1 = inlined_call_operand.vmem [shape: f32[8,1], index: 1, kind: input, shape index: {}]   ;;  %s444_s2 = inlined_call_operand.vmem [shape: f32[8,1], index: 2, kind: input, shape index: {}]   ;;  %s445_s3 = inlined_call_operand.vmem [shape: f32[2,8,256], index: 3, kind: output, shape index: {}, may-alias: {0,3}]  }
   0x1   :  { %s407_s14 = smov 0  }
   0x2 LB: > { %s25_s15 = sadd.s32 1, %s376_s13  ;;  %p323_p0 = scmp.ge.s32.totalorder %s380_s14, 1  ;;  %s380_s14 = sphi %s407_s14, %s13_s14   ;;  %s376_s13 = sphi %s405_s13, %s447_s13   ;;  %s372_s12 = sphi %s403_s12, %s446_s12  }
   0x3   : > { %p27_p1 = scmp.ge.s32.totalorder %s25_s15, 2  ;;  %p158_p2 = scmp.lt.s32.totalorder %s380_s14, 3 }
   0x5   : > { %s449_s15 = smov (%p27_p1, %s25_s15), 0  ;;  %p159_p3 = pnand %p323_p0, %p158_p2 }
   0x6   : > { %v212_v0 = vld [vmem:[%s443_s1] sm:$0xff] (!%p159_p3)  ;;  %v382_v1 = vmov (!%p159_p3), 0   ;;  %p191_p4 = scmp.lt.s32.totalorder (!%p159_p3), %s372_s12, 1 }
   0x7   : > { %162 = sbr.rel (%p159_p3) target bundleno = 145 (0x91), region = 32  ;;  %357 = vset.pattern.permute.xlu0 (!%p159_p3), %v382_v1  ;;  %v220_v2 = vld [vmem:[%s444_s2] sm:$0xff] (!%p159_p3) }
   0x8   : > { %215 = vperm.xlu0 (!%p159_p3), %357, %v212_v0  }
   0xc   : > { %223 = vperm.xlu0 (!%p159_p3), %357, %v220_v2  }
   0xe   : > { %s451_s12 = smov (!%p191_p4, %s372_s12), 1 }
   0xf   : > { %s330_s20 = sshll.u32 %s451_s12, 4 }
  0x10   : > { %s198_s23 = scalar_lea.vmem %s442_s0, %s330_s20  ;;  %s208_s26 = scalar_lea.vmem %s445_s3, %s330_s20 }
  0x11   : > { %v210_v4 = vld [vmem:[%s198_s23] sm:$0xff]  ;;  %v211_v5 = vld [vmem:[%s198_s23 + $0x8] sm:$0xff] }
  0x87   : > { %v216_v3 = vpop.permute.xlu0 %215 }
  0x88   : > { %v218_v6 = vmul.f32 %v216_v3, %v210_v4  ;;  %v219_v7 = vmul.f32 %v216_v3, %v211_v5 }
  0x8b   : > { %v224_v8 = vpop.permute.xlu0 %223 }
  0x8c   : > { %v226_v9 = vadd.f32 %v224_v8, %v218_v6  ;;  %v227_v10 = vadd.f32 %v224_v8, %v219_v7 }
  0x8e   : > { %v228_v11 = vmax.f32 %v226_v9, 0.0  ;;  %v229_v12 = vmax.f32 %v227_v10, 0.0 }
  0x90   : > { %230 = vst [vmem:[%s208_s26] sm:$0xff] %v228_v11  ;;  %231 = vst [vmem:[%s208_s26 + $0x8] sm:$0xff] %v229_v12 }
  0x91 PF: > { %s13_s14 = sadd.s32 1, %s380_s14   ;;  %s446_s12 = smov %s376_s13 }
  0x92   : > { %p10_p5 = scmp.ge.s32.totalorder %s13_s14, 4   ;;  %s447_s13 = smov %s449_s15 }
  0x94   :  { %12 = sbr.rel (!%p10_p5) target bundleno = 2 (0x2), region = 62 }

// kernel: conv_relu.2
= control target key start
LH: loop header
LB: loop body
LE: loop exit
PB: predicated region body
PF: predicated region fallthrough
CT: control target
= control target key end

     0   :  { %s874_s12 = smov 0   ;;  %s1014_s0 = inlined_call_operand.vmem [shape: f32[2,4,256], index: 0, kind: input, shape index: {}]   ;;  %s1015_s1 = inlined_call_operand.vmem [shape: bf16[8,36], index: 1, kind: input, shape index: {}]   ;;  %s1016_s2 = inlined_call_operand.vmem [shape: f32[2,8,256], index: 2, kind: output, shape index: {0}]   ;;  %s1017_s3 = inlined_call_operand.vmem [shape: f32[2,8,2], index: 3, kind: output, shape index: {1}]  }
   0x1 LB: > { %s777_s13 = sadd.s32 4294967295, %s843_s12   ;;  %p781_p0 = scmp.ge.s32.totalorder %s843_s12, 1  ;;  %s843_s12 = sphi %s874_s12, %s14_s12  }
   0x2   : > { %p140_p1 = scmp.lt.s32.totalorder %s843_s12, 3 }
   0x4   : > { %p141_p2 = pnand %p781_p0, %p140_p1 }
   0x5   : > { %v196_v0 = vlaneseq (!%p141_p2)  ;;  %v845_v1 = vmov (!%p141_p2), 0   ;;  %p168_p3 = scmp.lt.s32.totalorder (!%p141_p2), %s777_s13, 1  ;;  %s846_s18 = smov (!%p141_p2), 15  }
   0x6   : > { %144 = sbr.rel (%p141_p2) target bundleno = 643 (0x283), region = 28  ;;  %185 = vst [vmem:[#allocation2] sm:$0xff] (!%p141_p2), %v845_v1  ;;  %186 = vst [vmem:[#allocation2 + $0x8] sm:$0xff] (!%p141_p2), %v845_v1  ;;  %668 = vmatprep.mubr.bf16.mxu0 (!%p141_p2), %v845_v1  ;;  %s847_s19 = smov (!%p141_p2), 1  }
   0x7   : > { %187 = vst [vmem:[#allocation2 + $0x10] sm:$0xff] (!%p141_p2), %v845_v1  ;;  %188 = vst [vmem:[#allocation2 + $0x18] sm:$0xff] (!%p141_p2), %v845_v1  ;;  %v197_v2 = vand.u32 (!%p141_p2), 127, %v196_v0  ;;  %v234_v3 = vshrl.u32 (!%p141_p2), %v196_v0, 7  ;;  %s848_s20 = smov (!%p141_p2), 17   ;;  %s849_s21 = smov (!%p141_p2), 16  }
   0x8   : > { %189 = vst [vmem:[#allocation2 + $0x20] sm:$0x33] (!%p141_p2), %v845_v1  ;;  %s850_s22 = smov (!%p141_p2), 113   ;;  %s851_s23 = smov (!%p141_p2), 127  }
   0x9   : > { %v198_v4 = vadd.s32 (!%p141_p2), 128, %v197_v2  ;;  %v438_v5 = vand.u32 (!%p141_p2), 15, %v197_v2  ;;  %v890_v6 = vsub.s32 (!%p141_p2), 0, %v234_v3  ;;  %v199_v7 = vadd.s32 (!%p141_p2), 17, %v197_v2  ;;  %s852_s24 = smov (!%p141_p2), 111   ;;  %s853_s25 = smov (!%p141_p2), 112  }
   0xa   : > { %v354_v8 = vadd.s32 (!%p141_p2), 1, %v197_v2  ;;  %v893_v9 = vsub.s32 (!%p141_p2), 4, %v234_v3  ;;  %v288_v19 = vadd.s32 (!%p141_p2), 15, %v197_v2 }
   0xb   : > { %v445_v10 = vand.u32 (!%p141_p2), 15, %v198_v4  ;;  %vm895_vm0 = vcmp.ne.s32.totalorder (!%p141_p2), %v438_v5, 0  ;;  %v200_v12 = vadd.s32 (!%p141_p2), 17, %v198_v4  ;;  %vm904_vm1 = vcmp.ne.s32.totalorder (!%p141_p2), %v438_v5, 15 }
   0xc   : > { %v205_v15 = vand.u32 (!%p141_p2), 15, %v199_v7  ;;  %v355_v16 = vadd.s32 (!%p141_p2), 1, %v198_v4  ;;  %v360_v17 = vand.u32 (!%p141_p2), 15, %v354_v8  ;;  %v289_v23 = vadd.s32 (!%p141_p2), 15, %v198_v4 }
   0xd   : > { %s1031_s13 = smov (!%p168_p3, %s777_s13), 1  ;;  %vm506_vm2 = vcmp.ne.s32.totalorder %v445_v10, 0  ;;  %vm459_vm3 = vcmp.ne.s32.totalorder %v445_v10, 15  ;;  %v212_v20 = vand.u32 15, %v200_v12  ;;  %v294_v34 = vand.u32 15, %v288_v19 }
   0xe   : > { %s806_s14 = sshll.u32 %s1031_s13, 3  ;;  %vm511_vm4 = vmpackc.low %vm506_vm2, %vm895_vm0  ;;  %vm910_vm5 = vcmp.ne.s32.totalorder %v205_v15, 0  ;;  %v367_v22 = vand.u32 15, %v355_v16  ;;  %vm919_vm7 = vcmp.ne.s32.totalorder %v360_v17, 0  ;;  %v301_v35 = vand.u32 15, %v289_v23  ;;  %s807_s28 = sshll.u32 %s1031_s13, 4 }
   0xf   : > { %s172_s17 = scalar_lea.vmem %s1014_s0, %s806_s14  ;;  %v512_v24 = vsel %vm511_vm4, 65537, %v845_v1  ;;  %vm464_vm6 = vmpackc.low %vm459_vm3, %vm904_vm1  ;;  %vm226_vm8 = vcmp.ne.s32.totalorder %v212_v20, 0  ;;  %vm314_vm12 = vcmp.ne.s32.totalorder %v294_v34, 15  ;;  %s177_s4 = scalar_lea.vmem %s1016_s2, %s807_s28 }
  0x10   : > { %v260_v14 = vld [vmem:[%s172_s17] sm:$0xff]  ;;  %v516_v27 = vrot.slane %v512_v24, %v890_v6  ;;  %v465_v28 = vsel %vm464_vm6, 65537, %v845_v1  ;;  %vm231_vm9 = vmpackc.low %vm226_vm8, %vm910_vm5  ;;  %vm381_vm10 = vcmp.ne.s32.totalorder %v367_v22, 0  ;;  %v520_v32 = vrot.slane %v512_v24, %v893_v9  ;;  %s181_s7 = scalar_lea.vmem %s1017_s3, %s806_s14 }
  0x11   : > { %v262_v18 = vcombine.high %v260_v14, %v260_v14  ;;  %v925_v29 = vpack.c.bf16 %v260_v14, %v260_v14  ;;  %v469_v30 = vrot.slane %v465_v28, %v890_v6  ;;  %v232_v33 = vsel %vm231_vm9, 65537, %v845_v1  ;;  %vm386_vm11 = vmpackc.low %vm381_vm10, %vm919_vm7 }
  0x12   : > { %521 = vrot.lane.b32.xlu1 %v516_v27, %s846_s18  ;;  %v473_v36 = vrot.slane %v465_v28, %v893_v9  ;;  %v236_v37 = vrot.slane %v232_v33, %v890_v6  ;;  %v240_v38 = vrot.slane %v232_v33, %v893_v9  ;;  %v387_v39 = vsel %vm386_vm11, 65537, %v845_v1 }
  0x13   : > { %v917_v25 = vpack.c.bf16 %v262_v18, %v260_v14  ;;  %v928_v31 = vpack.c.bf16 %v262_v18, %v262_v18  ;;  %474 = vrot.lane.b32.xlu0 %v469_v30, %s847_s19  ;;  %v391_v40 = vrot.slane %v387_v39, %v890_v6  ;;  %v395_v41 = vrot.slane %v387_v39, %v893_v9 }
  0x14   : > { %vm315_vm13 = vcmp.ne.s32.totalorder %v301_v35, 15  ;;  %vm945_vm14 = vcmp.ne.s16.totalorder %v236_v37, 0  ;;  %vm949_vm15 = vcmp.ne.s16.totalorder %v240_v38, 0  ;;  %vm342_vm6 = vcmask 121856  }
  0x15   : > { %427 = vst [vmem:[#allocation2 + $0x10] sm:$0x33] %v917_v25  ;;  %vm320_vm0 = vmpackc.low %vm315_vm13, %vm314_vm12  ;;  %vm396_vm1 = vcmp.ne.s16.totalorder %v391_v40, 0  ;;  %vm397_vm2 = vcmp.ne.s16.totalorder %v395_v41, 0  ;;  %v243_v47 = vsel %vm945_vm14, %v925_v29, 0  ;;  %v244_v48 = vsel %vm949_vm15, %v928_v31, 0 }
  0x16   : > { %523 = vrot.lane.b32.xlu1 %v520_v32, %s846_s18  ;;  %v398_v44 = vsel %vm396_vm1, %v925_v29, 0  ;;  %v399_v45 = vsel %vm397_vm2, %v928_v31, 0  ;;  %v321_v46 = vsel %vm320_vm0, 65537, %v845_v1  ;;  %v271_v51 = vrot.slane %v917_v25, 6 }
  0x17   : > { %476 = vrot.lane.b32.xlu0 %v473_v36, %s847_s19  ;;  %v325_v49 = vrot.slane %v321_v46, %v890_v6  ;;  %v329_v50 = vrot.slane %v321_v46, %v893_v9  ;;  %v790_v52 = vcombine.low %v398_v44, %v399_v45  ;;  %v787_v53 = vcombine.low %v243_v47, %v244_v48  ;;  %v595_v45 = vld [vmem:[%s1015_s1] sm:$0xf] }
  0x18   : > { %vm409_vm7 = vcmask 7168   ;;  %vm253_vm11 = vcmask 138240   ;;  %vm278_vm12 = vcmask 1043586   ;;  %vm279_vm14 = vcmask 1047558  }
  0x19   : > { %vm330_vm3 = vcmp.ne.s16.totalorder %v325_v49, 0  ;;  %vm331_vm4 = vcmp.ne.s16.totalorder %v329_v50, 0  ;;  %v405_v56 = vrot.slane %v790_v52, 6  ;;  %vm256_vm15 = vcmask 1041544  }
  0x1a   : > { %574 = vrot.lane.b32.xlu1 %v473_v36, %s848_s20  ;;  %v332_v54 = vsel %vm330_vm3, %v925_v29, 0  ;;  %v333_v55 = vsel %vm331_vm4, %v928_v31, 0  ;;  %vm257_vm1 = vcmask 1045508   ;;  %vm275_vm2 = vcmask 130048   ;;  %vm280_vm3 = vmor %vm279_vm14, %vm278_vm12 }
  0x1b   : > { %572 = vrot.lane.b32.xlu0 %v469_v30, %s848_s20  ;;  %v789_v57 = vcombine.low %v332_v54, %v333_v55  ;;  %vm258_vm4 = vmor %vm257_vm1, %vm256_vm15  ;;  %vm542_vm12 = vcmask 922628   ;;  %vm495_vm15 = vcmask 1043458  }
  0x1e   : > { %272 = vrot.lane.b32.xlu1 %v271_v51, %s849_s21 }
  0x1f   : > { %250 = vrot.lane.b32.xlu0 %v787_v53, %s848_s20 }
  0x22   : > { %406 = vrot.lane.b32.xlu1 %v405_v56, %s847_s19 }
  0x23   : > { %339 = vrot.lane.b32.xlu0 %v789_v57, %s846_s18 }
  0x84   : > { %v522_v58 = vpop.permute.xlu1 %521 }
  0x85   : > { %v475_v59 = vpop.permute.xlu0 %474  ;;  %vm526_vm5 = vcmp.ne.s16.totalorder %v522_v58, 0 }
  0x86   : > { %v528_v61 = vsel %vm526_vm5, %v925_v29, 0  ;;  %vm479_vm8 = vcmp.ne.s16.totalorder %v475_v59, 0  ;;  %vm412_vm5 = vcmask 1043466  }
  0x87   : > { %v481_v2 = vsel %vm479_vm8, %v925_v29, 0  ;;  %vm345_vm8 = vcmask 1041528  }
  0x88   : > { %v524_v60 = vpop.permute.xlu1 %523 }
  0x89   : > { %v525_v62 = vsel %vm342_vm6, %v522_v58, %v524_v60  ;;  %v477_v63 = vpop.permute.xlu0 %476 }
  0x8a   : > { %vm527_vm9 = vcmp.ne.s16.totalorder %v525_v62, 0  ;;  %v478_v0 = vsel %vm409_vm7, %v475_v59, %v477_v63 }
  0x8b   : > { %v529_v1 = vsel %vm527_vm9, %v928_v31, 0  ;;  %vm480_vm10 = vcmp.ne.s16.totalorder %v478_v0, 0  ;;  %vm413_vm9 = vmor %vm279_vm14, %vm412_vm5 }
  0x8c   : > { %v482_v3 = vsel %vm480_vm10, %v928_v31, 0  ;;  %v793_v4 = vcombine.low %v528_v61, %v529_v1  ;;  %v575_v5 = vpop.permute.xlu1 %574  ;;  %vm346_vm10 = vmor %vm257_vm1, %vm345_vm8  ;;  %vm492_vm1 = vcmask 1039360   ;;  %vm560_vm8 = vcmask 916480  }
  0x8d   : > { %v792_v6 = vcombine.low %v481_v2, %v482_v3  ;;  %v573_v7 = vpop.permute.xlu0 %572 }
  0x8e   : > { %535 = vrot.lane.b32.xlu1 %v793_v4, %s850_s22  ;;  %v576_v8 = vsel %vm253_vm11, %v573_v7, %v575_v5  ;;  %vm577_vm13 = vcmp.ne.s16.totalorder %v573_v7, 0 }
  0x8f   : > { %vm578_vm0 = vcmp.ne.s16.totalorder %v576_v8, 0  ;;  %v579_v9 = vsel %vm577_vm13, %v925_v29, 0  ;;  %v488_v10 = vrot.slane %v792_v6, 6  ;;  %vm538_vm13 = vcmask 924672  }
  0x90   : > { %v580_v11 = vsel %vm578_vm0, %v928_v31, 0  ;;  %v273_v12 = vpop.permute.xlu1 %272  ;;  %vm496_vm0 = vcmask 1039366  }
  0x91   : > { %v795_v13 = vcombine.low %v579_v9, %v580_v11  ;;  %489 = vrot.lane.b32.xlu0 %v488_v10, %s851_s23  ;;  %v274_v14 = vrot.slane %v273_v12, 4  ;;  %v251_v15 = vpop.permute.xlu0 %250 }
  0x92   : > { %v252_v16 = vrot.slane %v251_v15, 4 }
  0x93   : > { %586 = vrot.lane.b32.xlu1 %v795_v13, %s852_s24  ;;  %v276_v17 = vsel %vm275_vm2, %v274_v14, %v273_v12  ;;  %vm592_vm2 = vcmask 906244  }
  0x94   : > { %281 = vst.msk [vmem:[#allocation2] sm:$0xcc] %vm280_vm3, %v276_v17  ;;  %v254_v18 = vsel %vm253_vm11, %v252_v16, %v251_v15  ;;  %v407_v19 = vpop.permute.xlu1 %406  ;;  %vm541_vm11 = vcmask 1041408   ;;  %vm563_vm3 = vcmask 916486  }
  0x95   : > { %557 = vrot.lane.b32.xlu0 %v271_v51, %s853_s25  ;;  %259 = vst.msk [vmem:[#allocation2] sm:$0x33] %vm258_vm4, %v254_v18  ;;  %v408_v20 = vrot.slane %v407_v19, 4  ;;  %v340_v21 = vpop.permute.xlu0 %339  ;;  %vm543_vm14 = vmor %vm542_vm12, %vm541_vm11  ;;  %vm589_vm4 = vcmask 908288  }
  0x96   : > { %v341_v22 = vrot.slane %v340_v21, 4  ;;  %vm593_vm5 = vmor %vm592_vm2, %vm541_vm11 }
  0x97   : > { %v410_v23 = vsel %vm409_vm7, %v408_v20, %v407_v19 }
  0x98   : > { %414 = vst.msk [vmem:[#allocation2 + $0x8] sm:$0xcc] %vm413_vm9, %v410_v23  ;;  %v343_v24 = vsel %vm342_vm6, %v341_v22, %v340_v21  ;;  %vm497_vm6 = vmor %vm496_vm0, %vm495_vm15 }
  0x99   : > { %347 = vst.msk [vmem:[#allocation2 + $0x8] sm:$0x33] %vm346_vm10, %v343_v24  ;;  %vm564_vm9 = vmor %vm563_vm3, %vm495_vm15  ;;  %vm626_vm10 = vcmask 293888  }
  0xa0   : > { %v829_v26 = vld [vmem:[#allocation2 + $0x4] ss:$8 sps:$4 sm:$0xff]   ;;  %v831_v27 = vld [vmem:[#allocation2] ss:$8 sps:$4 sm:$0xff]  }
  0xa1   : > { %636 = vmatprep.subr.bf16.mxu0 %v829_v26 }
  0xa2   : > { %637 = vmatpush1.bf16.msra.mxu0 %v831_v27 }
 0x100   : > { %v536_v25 = vpop.permute.xlu1 %535 }
 0x101   : > { %v537_v28 = vrot.slane %v536_v25, 4 }
 0x103   : > { %v539_v29 = vsel %vm538_vm13, %v536_v25, %v537_v28  ;;  %v490_v30 = vpop.permute.xlu0 %489 }
 0x104   : > { %544 = vst.msk [vmem:[#allocation2 + $0x18] sm:$0x33] %vm543_vm14, %v539_v29  ;;  %v491_v31 = vrot.slane %v490_v30, 4 }
 0x105   : > { %v587_v32 = vpop.permute.xlu1 %586 }
 0x106   : > { %v493_v33 = vsel %vm492_vm1, %v490_v30, %v491_v31  ;;  %v588_v34 = vrot.slane %v587_v32, 4 }
 0x107   : > { %498 = vst.msk [vmem:[#allocation2 + $0x10] sm:$0xcc] %vm497_vm6, %v493_v33  ;;  %v558_v35 = vpop.permute.xlu0 %557 }
 0x108   : > { %v559_v36 = vrot.slane %v558_v35, 4  ;;  %v590_v37 = vsel %vm589_vm4, %v587_v32, %v588_v34 }
 0x109   : > { %594 = vst.msk [vmem:[#allocation2 + $0x20] sm:$0x33] %vm593_vm5, %v590_v37 }
 0x10a   : > { %v561_v38 = vsel %vm560_vm8, %v558_v35, %v559_v36 }
 0x10b   : > { %565 = vst.msk [vmem:[#allocation2 + $0x18] sm:$0xcc] %vm564_vm9, %v561_v38 }
 0x110   : > { %v600_v39 = vld [vmem:[#allocation2 + $0x20] sm:$0x33] }
 0x111   : > { %v801_v42 = vcombine.high %v600_v39, %v600_v39  ;;  %v800_v43 = vcombine.low %v600_v39, %v600_v39 }
 0x112   : > { %v832_v40 = vld [vmem:[#allocation2 + $0x14] ss:$8 sps:$4 sm:$0xff]   ;;  %v834_v41 = vld [vmem:[#allocation2 + $0x10] ss:$8 sps:$4 sm:$0xff]  }
 0x113   : > { %638 = vmatprep.subr.bf16.mxu0 %v832_v40  ;;  %v631_v44 = vsel %vm541_vm11, %v800_v43, 0 }
 0x114   : > { %639 = vmatpush1.bf16.msra.mxu0 %v834_v41 }
 0x115   : > { %802 = vmatprep.subr.msk.bf16.mxu0 %vm541_vm11, %v801_v42  ;;  %vm687_vm11 = vcmask 15368  }
 0x118   : > { %641 = vmatpush1.bf16.msra.mxu0 %v631_v44 }
 0x11b   : > { %803 = vmatmul.mubr.msk.bf16.vlgmr.msra.gmra.mrb[0].mxu0 %vm626_vm10, %v595_v45 }
 0x1ee   : > { %v670_v46 = vpop.f32.mrb[0].mxu0 }
 0x1ef   : > { %689 = vst [vmem:[%s177_s4] sm:$0xff] %v670_v46  ;;  %v672_v47 = vpop.f32.mrb[1].mxu0  ;;  %v682_v48 = vmul.f32 %v670_v46, %v670_v46 }
 0x1f0   : > { %690 = vst [vmem:[%s177_s4 + $0x8] sm:$0xff] %v672_v47  ;;  %v674_v49 = vpop.f32.mrb[2].mxu0  ;;  %v677_v50 = vadd.f32 %v672_v47, %v670_v46  ;;  %v683_v51 = vmul.f32 %v672_v47, %v672_v47 }
 0x1f1   : > { %v675_v52 = vpop.f32.mrb[3].mxu0 }
 0x1f2   : > { %678 = vadd.xlane.f32.xlu0 %v677_v50  ;;  %v684_v53 = vadd.f32 %v683_v51, %v682_v48 }
 0x1f4   : > { %685 = vadd.xlane.f32.xlu1 %v684_v53 }
 0x27f   : > { %v679_v54 = vpop.xlane.xlu0 %678 }
 0x280   : > { %681 = vst.msk [vmem:[%s181_s7] sm:$0xff] %vm409_vm7, %v679_v54 }
 0x281   : > { %v686_v55 = vpop.xlane.xlu1 %685 }
 0x282   : > { %688 = vst.msk [vmem:[%s181_s7] sm:$0xff] %vm687_vm11, %v686_v55 }
 0x283 PF: > { %s14_s12 = sadd.s32 1, %s843_s12  }
 0x284   : > { %p11_p4 = scmp.ge.s32.totalorder %s14_s12, 4  }
 0x286   :  { %13 = sbr.rel (!%p11_p4) target bundleno = 1 (0x1), region = 70 }

</bundles_post_ra>
